<compile_context>
chip_gen: v7x
topology: tpu7x:2x2x1
jax: 0.10.0
libtpu: 0.0.40
codegen_flags: <defaults>
</compile_context>

<pallas_src>
import functools

import jax
import jax.numpy as jnp
from jax import lax
from jax.experimental import pallas as pl
from jax.experimental.pallas import tpu as pltpu


def _round_up(a, b):
    return ((a + b - 1) // b) * b


def _ffn_kernel(x_ref, w1_ref, b1_ref, w2_ref, vec_ref, avg_ref, o_ref, *,
                eps, valid_rows):
    """One packed row-tile of the FFN + residual + LayerNorm.

    x_ref  : (tm, PACK*H)       packed input rows (PACK original rows per vector row)
    w1_ref : (PACK*H, PACK*I)   block-diagonal W1
    b1_ref : (1, PACK*I)        lane-tiled b1
    w2_ref : (PACK*I, PACK*H)   block-diagonal W2
    vec_ref: (3, PACK*H)        rows = lane-tiled (b2, gamma, beta)
    avg_ref: (PACK*H, PACK*H)   block-diagonal segment-averaging matrix (f32)
    o_ref  : (tm, PACK*H)       packed output rows
    """
    x = x_ref[...].astype(jnp.float32)
    if valid_rows is not None:
        # Zero the ragged tail rows of the last block so LayerNorm never sees garbage;
        # Pallas drops the out-of-range writes anyway.
        row = (pl.program_id(0) * x_ref.shape[0]
               + lax.broadcasted_iota(jnp.int32, x.shape, 0))
        x = jnp.where(row < valid_rows, x, 0.0)

    mx = w1_ref.dtype  # bf16 by default (MXU-rate operands), f32 if requested.

    # Intermediate: Linear(H -> I) + exact erf GELU (PyTorch hidden_act="gelu").
    h = jnp.dot(x.astype(mx), w1_ref[...], preferred_element_type=jnp.float32)
    h = h + b1_ref[...].astype(jnp.float32)
    h = 0.5 * h * (1.0 + lax.erf(h * jnp.float32(0.7071067811865476)))

    # Output dense: Linear(I -> H) + residual (dropout == identity at inference).
    y = jnp.dot(h.astype(mx), w2_ref[...], preferred_element_type=jnp.float32)
    y = y + vec_ref[0:1, :] + x

    # LayerNorm over each original hidden row (32-lane segment), biased variance as in
    # torch.nn.LayerNorm.  Segment mean/var are computed + broadcast with f32 matmuls
    # against the block-diagonal averaging matrix.
    mean = jnp.dot(y, avg_ref[...], preferred_element_type=jnp.float32)
    cent = y - mean
    var = jnp.dot(cent * cent, avg_ref[...], preferred_element_type=jnp.float32)
    out = cent * lax.rsqrt(var + eps)
    out = out * vec_ref[1:2, :] + vec_ref[2:3, :]

    o_ref[...] = out.astype(o_ref.dtype)


def _choose_tile_rows(mp, lanes_in, lanes_mid, *, budget_bytes=8 << 20, cap=1024):
    """Packed-row tile: as large as the VMEM budget allows (amortizes the ~0.35 us
    per-grid-step overhead), but keep >= 2 grid steps for big slabs (v7x megacore)."""
    per_row = 4 * (4 * lanes_in          # x / out tiles, double-buffered, f32
                   + lanes_mid           # intermediate activation
                   + 5 * lanes_in)       # y / cent / stats temporaries (rough)
    fit = max((budget_bytes // per_row) // 8 * 8, 8)
    t = max(8, min(cap, fit))
    if mp <= t:
        # Whole slab would fit one step: keep it single-step when small, otherwise split
        # into two "parallel" steps so the second TensorCore (v7x) gets half the rows.
        t = _round_up(-(-mp // 2), 8) if mp >= 128 else mp
    return int(t)


def dim_four_ffn_pallas(x, w1, b1, w2, b2, gamma, beta, *, eps,
                        matmul_dtype=jnp.bfloat16, tile_rows=None):
    """x: (B, S, H) attention output. Returns (layer_output, attention_result)."""
    B, S, H = x.shape
    I = w1.shape[1]
    M = B * S

    # Pack PACK consecutive rows per 128-lane vector row (pure row-major view when
    # H divides 128); PACK == 1 falls back to the plain (masked-lane) layout.
    PACK = 128 // H if (H < 128 and 128 % H == 0) else 1
    lanes_in, lanes_mid = PACK * H, PACK * I

    Mp = _round_up(M, PACK)
    MPACK = Mp // PACK                       # packed rows

    x2d = x.reshape(M, H)
    if Mp != M:                              # rare: B*S not a multiple of PACK
        x2d = jnp.pad(x2d, ((0, Mp - M), (0, 0)))
    xp = x2d.reshape(MPACK, lanes_in)        # free (contiguous row-major) view

    if tile_rows is None:
        tm = _choose_tile_rows(MPACK, lanes_in, lanes_mid)
    else:
        tm = max(1, min(int(tile_rows), MPACK))
        if tm < MPACK:
            tm = max(8, (tm // 8) * 8)       # keep the sublane (8) alignment
    grid_m = -(-MPACK // tm)                 # cdiv — no divisibility requirement
    valid_rows = MPACK if grid_m * tm != MPACK else None   # ragged last block?

    # Block-diagonal packed weights (fills the MXU contraction to K = PACK*H / PACK*I)
    # plus the segment-averaging matrix used for the LayerNorm statistics.
    eye = jnp.eye(PACK, dtype=jnp.float32)
    w1_blk = jnp.kron(eye, w1.astype(jnp.float32)).astype(matmul_dtype)   # (PH, PI)
    w2_blk = jnp.kron(eye, w2.astype(jnp.float32)).astype(matmul_dtype)   # (PI, PH)
    avg = jnp.kron(eye, jnp.full((H, H), 1.0 / H, dtype=jnp.float32))     # (PH, PH)
    b1_blk = jnp.tile(b1.astype(jnp.float32), PACK).reshape(1, lanes_mid)
    vec = jnp.stack([jnp.tile(b2.astype(jnp.float32), PACK),
                     jnp.tile(gamma.astype(jnp.float32), PACK),
                     jnp.tile(beta.astype(jnp.float32), PACK)])           # (3, PH)

    # VMEM request derived from the real footprint (v7x has only 64 MiB physical/TC).
    w_bytes = jnp.dtype(matmul_dtype).itemsize
    vmem_est = (2 * 2 * lanes_in * lanes_mid * w_bytes      # W1_blk + W2_blk (dbl-buf)
                + 2 * lanes_in * lanes_in * 4               # averaging matrix (dbl-buf)
                + 4 * tm * lanes_in * 4                     # x / out tiles (dbl-buf)
                + tm * (lanes_mid + 6 * lanes_in) * 4       # in-kernel temporaries
                + 4 * (lanes_mid + 3 * lanes_in) * 4)       # bias / LayerNorm vectors
    vmem_limit = int(min(max(2 * vmem_est, 12 << 20), 24 << 20))

    out = pl.pallas_call(
        functools.partial(_ffn_kernel, eps=float(eps), valid_rows=valid_rows),
        out_shape=jax.ShapeDtypeStruct((MPACK, lanes_in), x.dtype),
        grid_spec=pltpu.PrefetchScalarGridSpec(
            num_scalar_prefetch=0,
            grid=(grid_m,),
            in_specs=[
                pl.BlockSpec((tm, lanes_in), lambda i: (i, 0)),         # packed x rows
                pl.BlockSpec((lanes_in, lanes_mid), lambda i: (0, 0)),  # W1 (resident)
                pl.BlockSpec((1, lanes_mid), lambda i: (0, 0)),         # b1
                pl.BlockSpec((lanes_mid, lanes_in), lambda i: (0, 0)),  # W2 (resident)
                pl.BlockSpec((3, lanes_in), lambda i: (0, 0)),          # b2/gamma/beta
                pl.BlockSpec((lanes_in, lanes_in), lambda i: (0, 0)),   # seg-avg matrix
            ],
            out_specs=pl.BlockSpec((tm, lanes_in), lambda i: (i, 0)),
        ),
        compiler_params=pltpu.CompilerParams(
            dimension_semantics=("parallel",),
            vmem_limit_bytes=vmem_limit,
        ),
    )(xp, w1_blk, b1_blk, w2_blk, vec, avg)

    out2d = out.reshape(Mp, H)
    if Mp != M:
        out2d = out2d[:M]
    layer_output = out2d.reshape(B, S, H)
    # Second tuple element mirrors the module's attention_result; the attention
    # sub-module is not implemented here (see TODO above), so it is empty.
    return (layer_output, ())


def _reference(x, w1, b1, w2, b2, gamma, beta, eps):
    h = x @ w1 + b1
    h = 0.5 * h * (1.0 + lax.erf(h / jnp.sqrt(2.0)))
    y = h @ w2 + b2 + x
    mean = jnp.mean(y, axis=-1, keepdims=True)
    var = jnp.mean((y - mean) ** 2, axis=-1, keepdims=True)
    y = (y - mean) * lax.rsqrt(var + eps)
    return y * gamma + beta


if __name__ == "__main__":
    # Module hyper-parameters (small, consistent with the forward pass).
    hidden_size = 32
    intermediate_size = 64
    layer_norm_eps = 1e-12
    B, S = 2, 8  # batch, number of spans

    key = jax.random.PRNGKey(0)
    kx, k1, k2, k3, k4, kx2, kx3 = jax.random.split(key, 7)

    x = jax.random.normal(kx, (B, S, hidden_size), dtype=jnp.float32)
    w1 = jax.random.normal(k1, (hidden_size, intermediate_size), jnp.float32) * 0.05
    b1 = jax.random.normal(k2, (intermediate_size,), jnp.float32) * 0.01
    w2 = jax.random.normal(k3, (intermediate_size, hidden_size), jnp.float32) * 0.05
    b2 = jax.random.normal(k4, (hidden_size,), jnp.float32) * 0.01
    gamma = jnp.ones((hidden_size,), jnp.float32)
    beta = jnp.zeros((hidden_size,), jnp.float32)

    ref = _reference(x, w1, b1, w2, b2, gamma, beta, layer_norm_eps)

    # Default path: bf16 MXU operands, f32 elementwise / LayerNorm math.
    out_bf16, attn_res = dim_four_ffn_pallas(x, w1, b1, w2, b2, gamma, beta,
                                             eps=layer_norm_eps)
    jax.block_until_ready(out_bf16)
    assert out_bf16.shape == (B, S, hidden_size)
    assert attn_res == ()
    assert jnp.allclose(out_bf16, ref, atol=2e-2, rtol=2e-2), "bf16-matmul path mismatch"

    # f32-matmul path for a tighter numerical check against the reference.
    out_f32, _ = dim_four_ffn_pallas(x, w1, b1, w2, b2, gamma, beta,
                                     eps=layer_norm_eps, matmul_dtype=jnp.float32)
    jax.block_until_ready(out_f32)
    assert jnp.allclose(out_f32, ref, atol=2e-3, rtol=2e-3), "f32-matmul path mismatch"

    # Ragged row count (B*S not a multiple of PACK) exercises the pad/slice fallback.
    x_odd = jax.random.normal(kx2, (2, 7, hidden_size), dtype=jnp.float32)
    ref_odd = _reference(x_odd, w1, b1, w2, b2, gamma, beta, layer_norm_eps)
    out_odd, _ = dim_four_ffn_pallas(x_odd, w1, b1, w2, b2, gamma, beta,
                                     eps=layer_norm_eps, matmul_dtype=jnp.float32)
    jax.block_until_ready(out_odd)
    assert out_odd.shape == (2, 7, hidden_size)
    assert jnp.allclose(out_odd, ref_odd, atol=2e-3, rtol=2e-3), "padded-rows path mismatch"

    # Larger slab: multi-step grid, ragged last block (in-kernel tail masking) and the
    # >=2 parallel grid steps used by the v7x megacore split.
    x_big = jax.random.normal(kx3, (3, 173, hidden_size), dtype=jnp.float32)
    ref_big = _reference(x_big, w1, b1, w2, b2, gamma, beta, layer_norm_eps)
    out_big, _ = dim_four_ffn_pallas(x_big, w1, b1, w2, b2, gamma, beta,
                                     eps=layer_norm_eps, matmul_dtype=jnp.float32)
    jax.block_until_ready(out_big)
    assert out_big.shape == (3, 173, hidden_size)
    assert jnp.allclose(out_big, ref_big, atol=2e-3, rtol=2e-3), "multi-step path mismatch"

    print("KERNEL_OK")
</pallas_src>

<mosaic_0001>
module attributes {stable_mosaic.version = 11 : i64} {
  func.func @_ffn_kernel(%arg0: i32, %arg1: memref<4x128xf32, #tpu.memory_space<vmem>>, %arg2: memref<128x256xbf16, #tpu.memory_space<vmem>>, %arg3: memref<1x256xf32, #tpu.memory_space<vmem>>, %arg4: memref<256x128xbf16, #tpu.memory_space<vmem>>, %arg5: memref<3x128xf32, #tpu.memory_space<vmem>>, %arg6: memref<128x128xf32, #tpu.memory_space<vmem>>, %arg7: memref<4x128xf32, #tpu.memory_space<vmem>>) attributes {dimension_semantics = [#tpu.dimension_semantics<parallel>], iteration_bounds = array<i64: 1>, scalar_prefetch = 0 : i64, scratch_operands = 0 : i64, tpu.core_type = #tpu.core_type<tc>, window_params = [{transform_indices = @transform_0, window_bounds = array<i64: 4, 128>}, {pipeline_mode = #tpu.pipeline_mode<synchronous>, transform_indices = @transform_1, window_bounds = array<i64: 128, 256>}, {pipeline_mode = #tpu.pipeline_mode<synchronous>, transform_indices = @transform_2, window_bounds = array<i64: 1, 256>}, {pipeline_mode = #tpu.pipeline_mode<synchronous>, transform_indices = @transform_3, window_bounds = array<i64: 256, 128>}, {pipeline_mode = #tpu.pipeline_mode<synchronous>, transform_indices = @transform_4, window_bounds = array<i64: 3, 128>}, {pipeline_mode = #tpu.pipeline_mode<synchronous>, transform_indices = @transform_5, window_bounds = array<i64: 128, 128>}, {transform_indices = @transform_6, window_bounds = array<i64: 4, 128>}]} {
    %c0 = arith.constant 0 : index
    %c0_0 = arith.constant 0 : index
    %0 = vector.load %arg1[%c0, %c0_0] : memref<4x128xf32, #tpu.memory_space<vmem>>, vector<4x128xf32>
    %1 = arith.truncf %0 : vector<4x128xf32> to vector<4x128xbf16>
    %c0_1 = arith.constant 0 : index
    %c0_2 = arith.constant 0 : index
    %2 = vector.load %arg2[%c0_1, %c0_2] : memref<128x256xbf16, #tpu.memory_space<vmem>>, vector<128x256xbf16>
    %cst = arith.constant dense<0.000000e+00> : vector<4x256xf32>
    %3 = tpu.matmul %1, %2, %cst {dimension_numbers = #tpu.dot_dimension_numbers<[1], [0], [0], [1], [0, 0, 1, 1], [], []>} : vector<4x128xbf16>, vector<128x256xbf16>, vector<4x256xf32> -> vector<4x256xf32>
    %c0_3 = arith.constant 0 : index
    %c0_4 = arith.constant 0 : index
    %4 = vector.load %arg3[%c0_3, %c0_4] : memref<1x256xf32, #tpu.memory_space<vmem>>, vector<1x256xf32>
    %5 = vector.broadcast %4 : vector<1x256xf32> to vector<4x256xf32>
    %6 = arith.addf %3, %5 : vector<4x256xf32>
    %cst_5 = arith.constant 5.000000e-01 : f32
    %7 = vector.broadcast %cst_5 : f32 to vector<4x256xf32>
    %8 = arith.mulf %7, %6 : vector<4x256xf32>
    %cst_6 = arith.constant 0.707106769 : f32
    %9 = vector.broadcast %cst_6 : f32 to vector<4x256xf32>
    %10 = arith.mulf %6, %9 : vector<4x256xf32>
    %11 = math.erf %10 : vector<4x256xf32>
    %cst_7 = arith.constant 1.000000e+00 : f32
    %12 = vector.broadcast %cst_7 : f32 to vector<4x256xf32>
    %13 = arith.addf %12, %11 : vector<4x256xf32>
    %14 = arith.mulf %8, %13 : vector<4x256xf32>
    %15 = arith.truncf %14 : vector<4x256xf32> to vector<4x256xbf16>
    %c0_8 = arith.constant 0 : index
    %c0_9 = arith.constant 0 : index
    %16 = vector.load %arg4[%c0_8, %c0_9] : memref<256x128xbf16, #tpu.memory_space<vmem>>, vector<256x128xbf16>
    %cst_10 = arith.constant dense<0.000000e+00> : vector<4x128xf32>
    %17 = tpu.matmul %15, %16, %cst_10 {dimension_numbers = #tpu.dot_dimension_numbers<[1], [0], [0], [1], [0, 0, 1, 1], [], []>} : vector<4x256xbf16>, vector<256x128xbf16>, vector<4x128xf32> -> vector<4x128xf32>
    %c0_11 = arith.constant 0 : index
    %c0_12 = arith.constant 0 : index
    %18 = vector.load %arg5[%c0_11, %c0_12] : memref<3x128xf32, #tpu.memory_space<vmem>>, vector<1x128xf32>
    %19 = vector.broadcast %18 : vector<1x128xf32> to vector<4x128xf32>
    %20 = arith.addf %17, %19 : vector<4x128xf32>
    %21 = arith.addf %20, %0 : vector<4x128xf32>
    %c0_13 = arith.constant 0 : index
    %c0_14 = arith.constant 0 : index
    %22 = vector.load %arg6[%c0_13, %c0_14] : memref<128x128xf32, #tpu.memory_space<vmem>>, vector<128x128xf32>
    %cst_15 = arith.constant dense<0.000000e+00> : vector<4x128xf32>
    %23 = tpu.matmul %21, %22, %cst_15 {dimension_numbers = #tpu.dot_dimension_numbers<[1], [0], [0], [1], [0, 0, 1, 1], [], []>} : vector<4x128xf32>, vector<128x128xf32>, vector<4x128xf32> -> vector<4x128xf32>
    %24 = arith.subf %21, %23 : vector<4x128xf32>
    %25 = arith.mulf %24, %24 : vector<4x128xf32>
    %c0_16 = arith.constant 0 : index
    %c0_17 = arith.constant 0 : index
    %26 = vector.load %arg6[%c0_16, %c0_17] : memref<128x128xf32, #tpu.memory_space<vmem>>, vector<128x128xf32>
    %cst_18 = arith.constant dense<0.000000e+00> : vector<4x128xf32>
    %27 = tpu.matmul %25, %26, %cst_18 {dimension_numbers = #tpu.dot_dimension_numbers<[1], [0], [0], [1], [0, 0, 1, 1], [], []>} : vector<4x128xf32>, vector<128x128xf32>, vector<4x128xf32> -> vector<4x128xf32>
    %cst_19 = arith.constant 9.99999996E-13 : f32
    %28 = vector.broadcast %cst_19 : f32 to vector<4x128xf32>
    %29 = arith.addf %27, %28 : vector<4x128xf32>
    %30 = math.rsqrt %29 : vector<4x128xf32>
    %31 = arith.mulf %24, %30 : vector<4x128xf32>
    %c1 = arith.constant 1 : index
    %c0_20 = arith.constant 0 : index
    %32 = vector.load %arg5[%c1, %c0_20] : memref<3x128xf32, #tpu.memory_space<vmem>>, vector<1x128xf32>
    %33 = vector.broadcast %32 : vector<1x128xf32> to vector<4x128xf32>
    %34 = arith.mulf %31, %33 : vector<4x128xf32>
    %c2 = arith.constant 2 : index
    %c0_21 = arith.constant 0 : index
    %35 = vector.load %arg5[%c2, %c0_21] : memref<3x128xf32, #tpu.memory_space<vmem>>, vector<1x128xf32>
    %36 = vector.broadcast %35 : vector<1x128xf32> to vector<4x128xf32>
    %37 = arith.addf %34, %36 : vector<4x128xf32>
    %c0_22 = arith.constant 0 : index
    %c0_23 = arith.constant 0 : index
    %38 = vector.load %arg7[%c0_22, %c0_23] : memref<4x128xf32, #tpu.memory_space<vmem>>, vector<4x128xf32>
    tpu.vector_store %arg7[%c0_22, %c0_23], %37 {strides = array<i32>} : memref<4x128xf32, #tpu.memory_space<vmem>>, vector<4x128xf32>,
    return
  }
  func.func @transform_0(%arg0: i32) -> (i32, i32) {
    %c0_i32 = arith.constant 0 : i32
    %c0_i32_0 = arith.constant 0 : i32
    return %arg0, %c0_i32 : i32, i32
  }
  func.func @transform_1(%arg0: i32) -> (i32, i32) {
    %c0_i32 = arith.constant 0 : i32
    %c0_i32_0 = arith.constant 0 : i32
    %c0_i32_1 = arith.constant 0 : i32
    return %c0_i32, %c0_i32_0 : i32, i32
  }
  func.func @transform_2(%arg0: i32) -> (i32, i32) {
    %c0_i32 = arith.constant 0 : i32
    %c0_i32_0 = arith.constant 0 : i32
    %c0_i32_1 = arith.constant 0 : i32
    return %c0_i32, %c0_i32_0 : i32, i32
  }
  func.func @transform_3(%arg0: i32) -> (i32, i32) {
    %c0_i32 = arith.constant 0 : i32
    %c0_i32_0 = arith.constant 0 : i32
    %c0_i32_1 = arith.constant 0 : i32
    return %c0_i32, %c0_i32_0 : i32, i32
  }
  func.func @transform_4(%arg0: i32) -> (i32, i32) {
    %c0_i32 = arith.constant 0 : i32
    %c0_i32_0 = arith.constant 0 : i32
    %c0_i32_1 = arith.constant 0 : i32
    return %c0_i32, %c0_i32_0 : i32, i32
  }
  func.func @transform_5(%arg0: i32) -> (i32, i32) {
    %c0_i32 = arith.constant 0 : i32
    %c0_i32_0 = arith.constant 0 : i32
    %c0_i32_1 = arith.constant 0 : i32
    return %c0_i32, %c0_i32_0 : i32, i32
  }
  func.func @transform_6(%arg0: i32) -> (i32, i32) {
    %c0_i32 = arith.constant 0 : i32
    %c0_i32_0 = arith.constant 0 : i32
    return %arg0, %c0_i32 : i32, i32
  }
}

</mosaic_0001>

<bundles_post_ra>
// kernel: tpu_custom_call.1
= control target key start
LH: loop header
LB: loop body
LE: loop exit
PB: predicated region body
PF: predicated region fallthrough
CT: control target
= control target key end

     0   :  { %11 = vsyncpa [#allocation3], 0  ;;  %s1138_s0 = inlined_call_operand.hbm [shape: f32[4,128], index: 0, kind: input, shape index: {}]   ;;  %s1139_s1 = inlined_call_operand.hbm [shape: bf16[128,256], index: 1, kind: input, shape index: {}]   ;;  %s1140_s2 = inlined_call_operand.vmem [shape: f32[1,256], index: 2, kind: input, shape index: {}]   ;;  %s1141_s3 = inlined_call_operand.hbm [shape: bf16[256,128], index: 3, kind: input, shape index: {}]   ;;  %s1142_s4 = inlined_call_operand.vmem [shape: f32[3,128], index: 4, kind: input, shape index: {}]   ;;  %s1143_s5 = inlined_call_operand.hbm [shape: f32[128,128], index: 5, kind: input, shape index: {}]   ;;  %s1144_s6 = inlined_call_operand.hbm [shape: f32[4,128], index: 6, kind: output, shape index: {}]  }
   0x1   :  { %12 = vsyncpa [#allocation6], 0 }
   0x2   :  { %13 = vsyncpa [#allocation9], 0 }
   0x3   :  { %14 = vsyncpa [#allocation4], 0  ;;  %s991_s21 = smov [#allocation5]   ;;  %s873_s25 = scalar_lea.hbm %s1139_s1, 2048 }
   0x4   :  { %s30_s22 = sshll.u32 %s991_s21, 4  ;;  %p874_p0 = scmp.ne.s32.totalorder %s1139_s1, %s873_s25  ;;  %s31_s22 = int_to_ptr.vmem [resolvable:$true] %s30_s22 }
   0x5   :  { %p877_p1 = scmp.lt.u32.totalorder %s873_s25, %s1139_s1 }
   0x7   :  { %p879_p2 = pnand %p877_p1, %p874_p0 }
   0x9   :  { %882 = shalt.err (!%p879_p2)
}
   0xa   :  { %s883_s30 = scalar_lea.vmem %s31_s22, 2048  ;;  %p888_p4 = scmp.lt.s32.totalorder %s31_s22, %s31_s22 }
   0xb   :  { %p884_p3 = scmp.ne.s32.totalorder %s31_s22, %s883_s30  ;;  %p889_p5 = scmp.lt.s32.totalorder %s883_s30, %s883_s30 }
   0xd   :  { %p890_p6 = por %p889_p5, %p888_p4 }
   0xf   :  { %p891_p7 = pnand %p890_p6, %p884_p3 }
  0x11   :  { %894 = shalt.err (!%p891_p7)
}
  0x12   :  { %s992_s7 = smov 128   ;;  %s993_s8 = smov 8  }
  0x13   :  { %36 = dma.hbm_to_vmem [thread:$0]  %s1139_s1, 2048, %s31_s22, [#allocation6], %s992_s7, %s992_s7, %s993_s8  }
  0x14   :  { %s994_s11 = smov [#allocation2]   ;;  %s995_s13 = smov [#allocation7]  }
  0x15   :  { %s21_s12 = sshll.u32 %s994_s11, 4  ;;  %s44_s14 = sshll.u32 %s995_s13, 4  ;;  %s22_s12 = int_to_ptr.vmem [resolvable:$true] %s21_s12  ;;  %s45_s14 = int_to_ptr.vmem [resolvable:$true] %s44_s14 }
  0x16   :  { %s895_s17 = scalar_lea.hbm %s1138_s0, 64 }
  0x17   :  { %p896_p8 = scmp.ne.s32.totalorder %s1138_s0, %s895_s17  ;;  %p899_p9 = scmp.lt.u32.totalorder %s895_s17, %s1138_s0 }
  0x19   :  { %p901_p10 = pnand %p899_p9, %p896_p8 }
  0x1b   :  { %904 = shalt.err (!%p901_p10)
}
  0x1c   :  { %s905_s1 = scalar_lea.vmem %s22_s12, 64  ;;  %p910_p12 = scmp.lt.s32.totalorder %s22_s12, %s22_s12 }
  0x1d   :  { %p906_p11 = scmp.ne.s32.totalorder %s22_s12, %s905_s1  ;;  %p911_p13 = scmp.lt.s32.totalorder %s905_s1, %s905_s1 }
  0x1f   :  { %p912_p0 = por %p911_p13, %p910_p12 }
  0x21   :  { %p913_p1 = pnand %p912_p0, %p906_p11 }
  0x23   :  { %916 = shalt.err (!%p913_p1)
}
  0x24   :  { %24 = dma.hbm_to_vmem [thread:$0]  %s1138_s0, 64, %s22_s12, [#allocation3]  }
  0x25   :  { %s917_s26 = scalar_lea.hbm %s1141_s3, 2048 }
  0x26   :  { %p918_p2 = scmp.ne.s32.totalorder %s1141_s3, %s917_s26  ;;  %p921_p3 = scmp.lt.u32.totalorder %s917_s26, %s1141_s3 }
  0x28   :  { %p923_p4 = pnand %p921_p3, %p918_p2 }
  0x2a   :  { %926 = shalt.err (!%p923_p4)
}
  0x2b   :  { %s927_s9 = scalar_lea.vmem %s45_s14, 2048  ;;  %p932_p6 = scmp.lt.s32.totalorder %s45_s14, %s45_s14 }
  0x2c   :  { %p928_p5 = scmp.ne.s32.totalorder %s45_s14, %s927_s9  ;;  %p933_p7 = scmp.lt.s32.totalorder %s927_s9, %s927_s9 }
  0x2e   :  { %p934_p8 = por %p933_p7, %p932_p6 }
  0x30   :  { %p935_p9 = pnand %p934_p8, %p928_p5 }
  0x32   :  { %938 = shalt.err (!%p935_p9)
}
  0x33   :  { %s996_s0 = smov 64   ;;  %s997_s10 = smov 4  }
  0x34   :  { %50 = dma.hbm_to_vmem [thread:$0]  %s1141_s3, 2048, %s45_s14, [#allocation6], %s996_s0, %s996_s0, %s997_s10  }
  0x35   :  { %s998_s13 = smov [#allocation8]   ;;  %s939_s18 = scalar_lea.hbm %s1143_s5, 2048 }
  0x36   :  { %s58_s15 = sshll.u32 %s998_s13, 4  ;;  %p940_p10 = scmp.ne.s32.totalorder %s1143_s5, %s939_s18  ;;  %s59_s15 = int_to_ptr.vmem [resolvable:$true] %s58_s15 }
  0x37   :  { %p943_p11 = scmp.lt.u32.totalorder %s939_s18, %s1143_s5 }
  0x39   :  { %p945_p12 = pnand %p943_p11, %p940_p10 }
  0x3b   :  { %948 = shalt.err (!%p945_p12)
}
  0x3c   :  { %s949_s22 = scalar_lea.vmem %s59_s15, 2048  ;;  %p954_p0 = scmp.lt.s32.totalorder %s59_s15, %s59_s15 }
  0x3d   :  { %p950_p13 = scmp.ne.s32.totalorder %s59_s15, %s949_s22  ;;  %p955_p1 = scmp.lt.s32.totalorder %s949_s22, %s949_s22 }
  0x3f   :  { %p956_p2 = por %p955_p1, %p954_p0 }
  0x41   :  { %p957_p3 = pnand %p956_p2, %p950_p13 }
  0x43   :  { %960 = shalt.err (!%p957_p3)
}
  0x44   :  { %64 = dma.hbm_to_vmem [thread:$0]  %s1143_s5, 2048, %s59_s15, [#allocation9], %s992_s7, %s992_s7, %s993_s8  }
  0x45   :  { %983 = dma.done.wait [#allocation3], 64  }
  0x46   :  { %984 = vsyncadd [#allocation3], 4294967232 }
  0x47   :  { %985 = dma.done.wait [#allocation6], 4096  }
  0x48   :  { %986 = vsyncadd [#allocation6], 4294963200 }
  0x49   :  { %987 = dma.done.wait [#allocation9], 2048  }
  0x4a   :  { %988 = vsyncadd [#allocation9], 4294965248  ;;  %v999_v0 = vmov 0   ;;  %v827_v1 = vld [vmem:[#allocation5 + $0x4] ss:$8 sps:$4 sm:$0xff]   ;;  %v855_v23 = vld [vmem:[#allocation7 + $0x50] sm:$0xff]   ;;  %v98_v54 = vlaneseq }
  0x4b   :  { %220 = vmatprep.mubr.bf16.mxu0 %v999_v0  ;;  %v829_v2 = vld [vmem:[#allocation5] ss:$8 sps:$4 sm:$0xff]   ;;  %188 = vmatprep.subr.bf16.mxu0 %v827_v1  ;;  %v830_v3 = vld [vmem:[#allocation5 + $0x14] ss:$8 sps:$4 sm:$0xff]   ;;  %v832_v4 = vld [vmem:[#allocation5 + $0x10] ss:$8 sps:$4 sm:$0xff]  }
  0x4c   :  { %189 = vmatpush1.bf16.msra.mxu0 %v829_v2  ;;  %v833_v5 = vld [vmem:[#allocation5 + $0x24] ss:$8 sps:$4 sm:$0xff]   ;;  %v835_v6 = vld [vmem:[#allocation5 + $0x20] ss:$8 sps:$4 sm:$0xff]   ;;  %v836_v7 = vld [vmem:[#allocation5 + $0x34] ss:$8 sps:$4 sm:$0xff]  }
  0x4d   :  { %190 = vmatprep.subr.bf16.mxu0 %v830_v3  ;;  %v838_v8 = vld [vmem:[#allocation5 + $0x30] ss:$8 sps:$4 sm:$0xff]   ;;  %v839_v9 = vld [vmem:[#allocation5 + $0x44] ss:$8 sps:$4 sm:$0xff]   ;;  %v841_v12 = vld [vmem:[#allocation5 + $0x40] ss:$8 sps:$4 sm:$0xff]  }
  0x4e   :  { %v851_v10 = vld [vmem:[#allocation7 + $0x40] sm:$0xff]   ;;  %v853_v13 = vld [vmem:[#allocation7 + $0x48] sm:$0xff]   ;;  %v842_v15 = vld [vmem:[#allocation5 + $0x54] ss:$8 sps:$4 sm:$0xff]   ;;  %v1000_v38 = vmov 0.0|0.0   ;;  %v99_v55 = vshrl.u32 %v98_v54, 7 }
  0x4f   :  { %v852_v11 = vld [vmem:[#allocation7] sm:$0xff]   ;;  %640 = vmatprep.subr.bf16.mxu1 %v851_v10  ;;  %v854_v14 = vld [vmem:[#allocation7 + $0x8] sm:$0xff]   ;;  %v844_v16 = vld [vmem:[#allocation5 + $0x50] ss:$8 sps:$4 sm:$0xff]   ;;  %vm1001_vm0 = vmmov 0   ;;  %s1003_s27 = smov [#allocation10]  }
  0x50   :  { %191 = vmatpush1.bf16.msra.mxu0 %v832_v4  ;;  %641 = vmatpush3.bf16.msra.mxu1 %v852_v11  ;;  %v845_v17 = vld [vmem:[#allocation5 + $0x64] ss:$8 sps:$4 sm:$0xff]   ;;  %v847_v18 = vld [vmem:[#allocation5 + $0x60] ss:$8 sps:$4 sm:$0xff]   ;;  %v848_v19 = vld [vmem:[#allocation5 + $0x74] ss:$8 sps:$4 sm:$0xff]  }
  0x51   :  { %192 = vmatprep.subr.bf16.mxu0 %v833_v5  ;;  %642 = vmatprep.subr.bf16.mxu1 %v853_v13  ;;  %v850_v20 = vld [vmem:[#allocation5 + $0x70] ss:$8 sps:$4 sm:$0xff]   ;;  %v1093_v21 = vld [vmem:[#allocation2] sm:$0xf]  ;;  %v859_v27 = vld [vmem:[#allocation7 + $0x60] sm:$0xff]   ;;  %v100_v56 = vsub.s32 0, %v99_v55 }
  0x52   :  { %v79_v22 = vpack.c.bf16 %v1093_v21, %v1093_v21  ;;  %v856_v24 = vld [vmem:[#allocation7 + $0x10] sm:$0xff]   ;;  %v857_v25 = vld [vmem:[#allocation7 + $0x58] sm:$0xff]   ;;  %v860_v28 = vld [vmem:[#allocation7 + $0x20] sm:$0xff]   ;;  %v104_v58 = vsub.s32 1, %v99_v55  ;;  %s594_s28 = sshll.u32 %s1003_s27, 4  ;;  %s595_s28 = int_to_ptr.vmem [resolvable:$true] %s594_s28 }
  0x53   :  { %v858_v26 = vld [vmem:[#allocation7 + $0x18] sm:$0xff]   ;;  %v861_v29 = vld [vmem:[#allocation7 + $0x68] sm:$0xff]   ;;  %v863_v31 = vld [vmem:[#allocation7 + $0x70] sm:$0xff]   ;;  %s961_s29 = scalar_lea.vmem %s595_s28, 64  ;;  %p966_p5 = scmp.lt.s32.totalorder %s595_s28, %s595_s28 }
  0x54   :  { %193 = vmatpush1.bf16.msra.mxu0 %v835_v6  ;;  %643 = vmatpush3.bf16.msra.mxu1 %v854_v14  ;;  %v862_v30 = vld [vmem:[#allocation7 + $0x28] sm:$0xff]   ;;  %v864_v32 = vld [vmem:[#allocation7 + $0x30] sm:$0xff]   ;;  %v865_v33 = vld [vmem:[#allocation7 + $0x78] sm:$0xff]   ;;  %p962_p4 = scmp.ne.s32.totalorder %s595_s28, %s961_s29  ;;  %p967_p6 = scmp.lt.s32.totalorder %s961_s29, %s961_s29 }
  0x55   :  { %194 = vmatprep.subr.bf16.mxu0 %v836_v7  ;;  %644 = vmatprep.subr.bf16.mxu1 %v855_v23  ;;  %v866_v34 = vld [vmem:[#allocation7 + $0x38] sm:$0xff]   ;;  %v415_v35 = vld [vmem:[#allocation8] sm:$0xff]  ;;  %v416_v36 = vld [vmem:[#allocation8 + $0x8] sm:$0xff] }
  0x56   :  { %v417_v37 = vld [vmem:[#allocation8 + $0x10] sm:$0xff]  ;;  %v767_v39 = vpack.c.bf16 %v416_v36, %v415_v35  ;;  %v418_v40 = vld [vmem:[#allocation8 + $0x18] sm:$0xff]  ;;  %v419_v42 = vld [vmem:[#allocation8 + $0x20] sm:$0xff]  ;;  %p968_p7 = por %p967_p6, %p966_p5 }
  0x57   :  { %v770_v41 = vpack.c.bf16 %v418_v40, %v417_v37  ;;  %v420_v43 = vld [vmem:[#allocation8 + $0x28] sm:$0xff]  ;;  %v421_v45 = vld [vmem:[#allocation8 + $0x30] sm:$0xff]  ;;  %v422_v46 = vld [vmem:[#allocation8 + $0x38] sm:$0xff] }
  0x58   :  { %195 = vmatpush1.bf16.msra.mxu0 %v838_v8  ;;  %645 = vmatpush3.bf16.msra.mxu1 %v856_v24  ;;  %v773_v44 = vpack.c.bf16 %v420_v43, %v419_v42  ;;  %v776_v47 = vpack.c.bf16 %v422_v46, %v421_v45  ;;  %v423_v48 = vld [vmem:[#allocation8 + $0x40] sm:$0xff]  ;;  %v424_v49 = vld [vmem:[#allocation8 + $0x48] sm:$0xff]  ;;  %v425_v51 = vld [vmem:[#allocation8 + $0x50] sm:$0xff]  ;;  %p969_p8 = pnand %p968_p7, %p962_p4 }
  0x59   :  { %196 = vmatprep.subr.bf16.mxu0 %v839_v9  ;;  %646 = vmatprep.subr.bf16.mxu1 %v857_v25  ;;  %v779_v50 = vpack.c.bf16 %v424_v49, %v423_v48  ;;  %v426_v52 = vld [vmem:[#allocation8 + $0x58] sm:$0xff] }
  0x5a   :  { %v782_v53 = vpack.c.bf16 %v426_v52, %v425_v51  ;;  %v96_v57 = vld [vmem:[%s1140_s2] sm:$0x3] }
  0x5b   :  { %v101_v59 = vrot.slane %v96_v57, %v100_v56  ;;  %v105_v60 = vrot.slane %v96_v57, %v104_v58  ;;  %v621_v24 = vld [vmem:[%s1142_s4] ss:$0 sm:$0xff] }
  0x5c   :  { %197 = vmatpush1.bf16.msra.mxu0 %v841_v12  ;;  %647 = vmatpush3.bf16.msra.mxu1 %v858_v26 }
  0x5d   :  { %198 = vmatprep.subr.bf16.mxu0 %v842_v15  ;;  %648 = vmatprep.subr.bf16.mxu1 %v859_v27  ;;  %v427_v15 = vld [vmem:[#allocation8 + $0x60] sm:$0xff] }
  0x60   :  { %199 = vmatpush1.bf16.msra.mxu0 %v844_v16  ;;  %649 = vmatpush3.bf16.msra.mxu1 %v860_v28  ;;  %v428_v16 = vld [vmem:[#allocation8 + $0x68] sm:$0xff] }
  0x61   :  { %200 = vmatprep.subr.bf16.mxu0 %v845_v17  ;;  %650 = vmatprep.subr.bf16.mxu1 %v861_v29  ;;  %v785_v17 = vpack.c.bf16 %v428_v16, %v427_v15 }
  0x64   :  { %201 = vmatpush1.bf16.msra.mxu0 %v847_v18  ;;  %651 = vmatpush3.bf16.msra.mxu1 %v862_v30  ;;  %v429_v18 = vld [vmem:[#allocation8 + $0x70] sm:$0xff] }
  0x65   :  { %202 = vmatprep.subr.bf16.mxu0 %v848_v19  ;;  %652 = vmatprep.subr.bf16.mxu1 %v863_v31  ;;  %v430_v19 = vld [vmem:[#allocation8 + $0x78] sm:$0xff] }
  0x68   :  { %203 = vmatpush1.bf16.msra.mxu0 %v850_v20  ;;  %653 = vmatpush3.bf16.msra.mxu1 %v864_v32  ;;  %v788_v20 = vpack.c.bf16 %v430_v19, %v429_v18 }
  0x69   :  { %654 = vmatprep.subr.bf16.mxu1 %v865_v33  ;;  %766 = vmatprep.subr.bf16.mxu0 %v1000_v38 }
  0x6b   :  { %221 = vmatmul.mubr.bf16.vlgmr.msra.gmra.mrb[0].mxu0 %v79_v22  ;;  %v1002_v22 = vmov 0.0  }
  0x6c   :  { %655 = vmatpush3.bf16.msra.mxu1 %v866_v34  ;;  %768 = vmatpush3.bf16.msra.mxu0 %v767_v39 }
  0x6d   :  { %790 = vmatprep.subr.bf16.mxu1 %v1000_v38  ;;  %769 = vmatprep.subr.bf16.mxu0 %v1000_v38 }
  0x6e   :  { %728 = vmatprep.mubr.msk.f32.mxu0 %vm1001_vm0, %v1002_v22 }
  0x70   :  { %771 = vmatpush3.bf16.msra.mxu0 %v770_v41 }
  0x71   :  { %772 = vmatprep.subr.bf16.mxu0 %v1000_v38 }
  0x74   :  { %774 = vmatpush3.bf16.msra.mxu0 %v773_v44 }
  0x75   :  { %775 = vmatprep.subr.bf16.mxu0 %v1000_v38 }
  0x78   :  { %777 = vmatpush3.bf16.msra.mxu0 %v776_v47 }
  0x79   :  { %778 = vmatprep.subr.bf16.mxu0 %v1000_v38 }
  0x7c   :  { %780 = vmatpush3.bf16.msra.mxu0 %v779_v50 }
  0x7d   :  { %781 = vmatprep.subr.bf16.mxu0 %v1000_v38 }
  0x80   :  { %783 = vmatpush3.bf16.msra.mxu0 %v782_v53 }
  0x81   :  { %784 = vmatprep.subr.bf16.mxu0 %v1000_v38 }
  0x84   :  { %786 = vmatpush3.bf16.msra.mxu0 %v785_v17 }
  0x85   :  { %787 = vmatprep.subr.bf16.mxu0 %v1000_v38 }
  0x88   :  { %789 = vmatpush3.bf16.msra.mxu0 %v788_v20 }
 0x13e   :  { %v222_v61 = vpop.f32.mrb[0].mxu0 }
 0x13f   :  { %v223_v62 = vadd.f32 %v222_v61, %v101_v59  ;;  %v224_v63 = vpop.f32.mrb[1].mxu0 }
 0x140   :  { %v225_v0 = vadd.f32 %v224_v63, %v105_v60  ;;  %v226_v1 = vpop.f32.mrb[2].mxu0 }
 0x141   :  { %v231_v2 = vmul.f32 0.70710677, %v223_v62  ;;  %v227_v3 = vpop.f32.mrb[3].mxu0  ;;  %v229_v7 = vmul.f32 0.5, %v223_v62 }
 0x142   :  { %v232_v4 = vmul.f32 0.70710677, %v225_v0  ;;  %v230_v9 = vmul.f32 0.5, %v225_v0 }
 0x143   :  { %867 = verf.f32 %v231_v2 }
 0x144   :  { %869 = verf.f32 %v232_v4 }
 0x14d   :  { %v868_v5 = vpop.eup %867 }
 0x14e   :  { %v870_v6 = vpop.eup %869  ;;  %v235_v8 = vadd.f32 1.0, %v868_v5 }
 0x14f   :  { %v236_v10 = vadd.f32 1.0, %v870_v6 }
 0x150   :  { %v237_v11 = vmul.f32 %v235_v8, %v229_v7 }
 0x151   :  { %v238_v12 = vmul.f32 %v236_v10, %v230_v9 }
 0x152   :  { %v239_v14 = vpack.c.bf16 %v237_v11, %v237_v11 }
 0x153   :  { %v240_v13 = vpack.c.bf16 %v238_v12, %v238_v12 }
 0x155   :  { %406 = vmatprep.mubr.bf16.mxu1 %v240_v13 }
 0x156   :  { %407 = vmatmul.mubr.bf16.vlgmr.msra.gmra.mrb[0].mxu1 %v239_v14 }
 0x157   :  { %792 = vmatpush3.bf16.msra.mxu1 %v767_v39  ;;  %763 = vmatprep.mubr.msk.f32.mxu1 %vm1001_vm0, %v1002_v22  ;;  %v638_v39 = vld [vmem:[%s1142_s4 + $0x1] ss:$0 sm:$0xff] }
 0x158   :  { %793 = vmatprep.subr.bf16.mxu1 %v1000_v38 }
 0x15b   :  { %795 = vmatpush3.bf16.msra.mxu1 %v770_v41 }
 0x15c   :  { %796 = vmatprep.subr.bf16.mxu1 %v1000_v38 }
 0x15f   :  { %798 = vmatpush3.bf16.msra.mxu1 %v773_v44 }
 0x160   :  { %799 = vmatprep.subr.bf16.mxu1 %v1000_v38 }
 0x163   :  { %801 = vmatpush3.bf16.msra.mxu1 %v776_v47 }
 0x164   :  { %802 = vmatprep.subr.bf16.mxu1 %v1000_v38 }
 0x167   :  { %804 = vmatpush3.bf16.msra.mxu1 %v779_v50 }
 0x168   :  { %805 = vmatprep.subr.bf16.mxu1 %v1000_v38 }
 0x16b   :  { %807 = vmatpush3.bf16.msra.mxu1 %v782_v53 }
 0x16c   :  { %808 = vmatprep.subr.bf16.mxu1 %v1000_v38 }
 0x16f   :  { %810 = vmatpush3.bf16.msra.mxu1 %v785_v17 }
 0x170   :  { %811 = vmatprep.subr.bf16.mxu1 %v1000_v38 }
 0x173   :  { %813 = vmatpush3.bf16.msra.mxu1 %v788_v20 }
 0x229   :  { %v656_v23 = vpop.f32.mrb[0].mxu1 }
 0x22a   :  { %v657_v25 = vpop.f32.mrb[1].mxu1 }
 0x22b   :  { %v658_v26 = vadd.f32 %v657_v25, %v656_v23  ;;  %v659_v27 = vpop.f32.mrb[2].mxu1 }
 0x22c   :  { %v660_v28 = vpop.f32.mrb[3].mxu1 }
 0x22d   :  { %v409_v29 = vadd.f32 %v658_v26, %v621_v24 }
 0x22f   :  { %v414_v30 = vadd.f32 %v409_v29, %v1093_v21  ;;  %v639_v21 = vld [vmem:[%s1142_s4 + $0x2] ss:$0 sm:$0xff] }
 0x231   :  { %729 = vmatmul.mubr.f32.vlgmr.msra.gmra.mrb[4].mxu0 %v414_v30 }
 0x304   :  { %v497_v31 = vpop.f32.mrb[4].mxu0 }
 0x305   :  { %v501_v32 = vsub.f32 %v414_v30, %v497_v31  ;;  %v730_v33 = vpop.f32.mrb[5].mxu0 }
 0x307   :  { %v502_v34 = vmul.f32 %v501_v32, %v501_v32 }
 0x309   :  { %764 = vmatmul.mubr.f32.vlgmr.msra.gmra.mrb[4].mxu1 %v502_v34 }
 0x3dc   :  { %v569_v35 = vpop.f32.mrb[4].mxu1 }
 0x3dd   :  { %v570_v36 = vadd.f32 1e-12, %v569_v35  ;;  %v765_v37 = vpop.f32.mrb[5].mxu1 }
 0x3df   :  { %871 = vrsqrt.f32 %v570_v36 }
 0x3e9   :  { %v872_v38 = vpop.eup %871 }
 0x3ea   :  { %v574_v40 = vmul.f32 %v872_v38, %v501_v32 }
 0x3ec   :  { %v580_v41 = vmul.f32 %v638_v39, %v574_v40 }
 0x3ee   :  { %v586_v42 = vadd.f32 %v639_v21, %v580_v41 }
 0x3f0   :  { %587 = vst [vmem:[#allocation10] sm:$0xf] %v586_v42 }
 0x3f1   :  { %972 = shalt.err (!%p969_p8)
}
 0x3f2   :  { %s973_s0 = scalar_lea.hbm %s1144_s6, 64 }
 0x3f3   :  { %p974_p9 = scmp.ne.s32.totalorder %s1144_s6, %s973_s0  ;;  %p977_p10 = scmp.lt.u32.totalorder %s973_s0, %s1144_s6 }
 0x3f5   :  { %p979_p11 = pnand %p977_p10, %p974_p9 }
 0x3f7   :  { %982 = shalt.err (!%p979_p11)
}
 0x3f8   :  { %597 = dma.vmem_to_hbm [thread:$0]  %s595_s28, 64, %s1144_s6, [#allocation4]  }
 0x3f9   :  { %989 = dma.done.wait [#allocation4], 64  }
 0x3fa   :  { %990 = vsyncadd [#allocation4], 4294967232 }
 0x3fb   :  { %601 = vsyncpa [#allocation3], 1 }
 0x3fc   :  { %602 = vsyncpa [#allocation6], 1 }
 0x3fd   :  { %603 = vsyncpa [#allocation9], 1 }
 0x3fe   :  { %604 = vsyncpa [#allocation4], 1 }

</bundles_post_ra>
